<compile_context>
chip_gen: v5e
topology: v5e:2x2
jax: 0.10.0
libtpu: 0.0.40
codegen_flags: <defaults>
</compile_context>

<pallas_src>
import functools
import math
from types import SimpleNamespace

import jax
import jax.numpy as jnp
from jax import lax
from jax.experimental import pallas as pl
from jax.experimental.pallas import tpu as pltpu


# Contraction on dim 1 of both operands == A @ B.T, fed to the MXU directly
# (no XLU vxpose, no transposed VMEM temporary).
_DN_RHS_T = (((1,), (1,)), ((), ()))


# ---------------------------------------------------------------------------
# Pallas kernel: fused time-lerp + 3 MXU matmuls + softmax + final matmul
# ---------------------------------------------------------------------------
def _odefunc_kernel(idx_ref,          # SMEM (2,)  int32 : [lo, hi] (scalar prefetch)
                    enc_lo_ref,       # VMEM (1, N, H)   : encode[lo]
                    enc_hi_ref,       # VMEM (1, N, H)   : encode[hi]
                    alpha_ref,        # SMEM (1,)  f32   : interpolation weight
                    w1_ref, w2_ref,   # VMEM (H, H)      : torch layout (out, in)
                    x_ref,            # VMEM (N, H)
                    out_ref,          # VMEM (N, H)
                    *, inv_sqrt_h):
    del idx_ref  # consumed only by the index_maps
    alpha = alpha_ref[0]
    enc_lo = enc_lo_ref[0].astype(jnp.float32)
    enc_hi = enc_hi_ref[0].astype(jnp.float32)
    # fused time interpolation — removes the separate XLA lerp op and the
    # write+read HBM round-trip of `control_gradient`.
    cg = (1.0 - alpha) * enc_lo + alpha * enc_hi                        # (N, H)

    w1 = w1_ref[...].astype(jnp.float32)
    w2 = w2_ref[...].astype(jnp.float32)
    x = x_ref[...].astype(jnp.float32)

    # nn.Linear(bias=False): y = cg @ W.T, as dot_general contracting dim 1.
    out1 = lax.dot_general(cg, w1, _DN_RHS_T, preferred_element_type=jnp.float32)
    out2 = lax.dot_general(cg, w2, _DN_RHS_T, preferred_element_type=jnp.float32)

    scores = lax.dot_general(out1, out2, _DN_RHS_T,
                             preferred_element_type=jnp.float32) * inv_sqrt_h  # (N, N)

    # numerically stable softmax; reciprocal goes to the otherwise-idle EUP slot.
    m = jnp.max(scores, axis=-1, keepdims=True)
    e = jnp.exp(scores - m)
    denom = jnp.sum(e, axis=-1, keepdims=True)
    attn = e * pl.reciprocal(denom, approx=True)                        # (N, N)

    out_ref[...] = jnp.dot(attn, x,
                           preferred_element_type=jnp.float32).astype(out_ref.dtype)


def _odefunc_fused(encode, idx, alpha, w1, w2, x):
    T, N, H = encode.shape
    kernel = functools.partial(_odefunc_kernel, inv_sqrt_h=1.0 / math.sqrt(H))
    grid_spec = pltpu.PrefetchScalarGridSpec(
        num_scalar_prefetch=1,      # idx -> SMEM, feeds the encode index_maps
        grid=(1,),
        in_specs=[
            pl.BlockSpec((1, N, H), lambda i, idx: (idx[0], 0, 0)),   # encode[lo]
            pl.BlockSpec((1, N, H), lambda i, idx: (idx[1], 0, 0)),   # encode[hi]
            pl.BlockSpec(memory_space=pltpu.MemorySpace.SMEM),        # alpha (scalar)
            pl.BlockSpec((H, H), lambda i, idx: (0, 0)),              # W1
            pl.BlockSpec((H, H), lambda i, idx: (0, 0)),              # W2
            pl.BlockSpec((N, H), lambda i, idx: (0, 0)),              # x
        ],
        out_specs=pl.BlockSpec((N, H), lambda i, idx: (0, 0)),
    )
    return pl.pallas_call(
        kernel,
        out_shape=jax.ShapeDtypeStruct((N, H), jnp.float32),
        grid_spec=grid_spec,
        # working set is a few tens of KiB — do NOT request an oversized VMEM limit
        compiler_params=pltpu.CompilerParams(dimension_semantics=("arbitrary",)),
    )(idx, encode, encode, alpha, w1, w2, x)


# One jit wrapper: single compile for all t; every subsequent RHS eval is a cache hit.
_odefunc_fused_jit = jax.jit(_odefunc_fused)


# ---------------------------------------------------------------------------
# ODEFunc (JAX): static Python-t control flow -> (lo, hi, alpha) + fused kernel
# ---------------------------------------------------------------------------
class ODEFunc:
    def __init__(self, args, hidden_size, encodings, dropout=0.1, key=None):
        self.args = args
        self.hidden_size = hidden_size
        self.dropout = dropout                      # unused in forward (eval semantics)
        self.encode = jnp.asarray(encodings, jnp.float32)   # (T, N, H)

        key = jax.random.PRNGKey(0) if key is None else key
        k_tp, k1, k2, k3 = jax.random.split(key, 4)
        bound = 1.0 / math.sqrt(hidden_size)        # torch.nn.Linear default init range
        # timeparament and W3 (L3) are intentionally unused in forward, matching the
        # original module which never touches them in its forward pass.
        self.timeparament = jax.random.uniform(k_tp, (1, hidden_size),
                                               minval=-bound, maxval=bound)
        self.W1 = jax.random.uniform(k1, (hidden_size, hidden_size),
                                     minval=-bound, maxval=bound)
        self.W2 = jax.random.uniform(k2, (hidden_size, hidden_size),
                                     minval=-bound, maxval=bound)
        self.W3 = jax.random.uniform(k3, (hidden_size, hidden_size),
                                     minval=-bound, maxval=bound)

        if self.args.tasktype == 'data_scarce':
            self.data = list(map(int, self.args.scare_snapshot.split(',')))

    def _time_controls(self, t):
        """Python-float t (static, as in the PyTorch module) -> (lo, hi, alpha)."""
        T = int(self.encode.shape[0])
        if self.args.tasktype == 'data_scarce':
            if int(t) == t and int(t) < T - 1 and (int(t) not in self.data):
                return int(t), int(t), 0.0
            elif int(t) < T - 1:
                control_low = math.floor(t)
                control_high = math.ceil(t)
                for i in range(math.floor(t), -1, -1):
                    if i not in self.data:
                        control_low = i
                        break
                for i in range(math.ceil(t), T):
                    if i not in self.data:
                        control_high = i
                        break
                if control_high == control_low:   # degenerate case: no interpolation
                    return control_low, control_low, 0.0
                alpha = (t - control_low) / (control_high - control_low)
                return control_low, control_high, float(alpha)
            else:
                return T - 1, T - 1, 0.0
        elif int(t) == t and int(t) < T - 1:
            return int(t), int(t), 0.0
        elif int(t) < T - 1:
            return int(t), int(t) + 1, float(t - int(t))
        else:
            return T - 1, T - 1, 0.0

    def forward(self, t, x):
        lo, hi, alpha = self._time_controls(float(t))
        idx = jnp.array([lo, hi], dtype=jnp.int32)
        alpha_arr = jnp.array([alpha], dtype=jnp.float32)
        return _odefunc_fused_jit(self.encode, idx, alpha_arr, self.W1, self.W2, x)

    __call__ = forward


# ---------------------------------------------------------------------------
# ODEBlock (JAX): initial linear projection + ODE integration driving ODEFunc
# ---------------------------------------------------------------------------
class ODEBlock:
    def __init__(self, args, encoding_size, time_steps, dropout=0.0, rtol=0.01,
                 atol=0.001, method='rk4', adjoint=True, terminal=False, key=None):
        self.args = args
        self.encoding_size = encoding_size
        self.integration_time_vector = time_steps
        self.drop = dropout
        self.rtol, self.atol = rtol, atol
        self.method = method
        self.adjoint = adjoint
        self.terminal = terminal
        key = jax.random.PRNGKey(1) if key is None else key
        k_w, k_b, self._func_key = jax.random.split(key, 3)
        bound = 1.0 / math.sqrt(encoding_size)
        self.W_L = jax.random.uniform(k_w, (encoding_size, encoding_size),
                                      minval=-bound, maxval=bound)
        self.b_L = jax.random.uniform(k_b, (encoding_size,),
                                      minval=-bound, maxval=bound)

    def bulid_odefunc(self, encodings):
        self.func = ODEFunc(self.args, self.encoding_size, encodings=encodings,
                            dropout=self.drop, key=self._func_key)
        return self.func

    def forward(self, encodings):
        odefunc = self.bulid_odefunc(encodings)
        # one-time per forward (not hot): nn.Linear with bias on encodings[0]
        odefirst = encodings[0].astype(jnp.float32) @ self.W_L.T + self.b_L
        # TODO(synk): torchdiffeq odeint_adjoint (adaptive dopri5 + adjoint) has no
        # clean Pallas/JAX equivalent here; fixed-step RK4 over the supplied time
        # grid drives the fused Pallas RHS kernel instead.
        ts = [float(t) for t in self.integration_time_vector]
        y = odefirst
        ys = [y]
        for t0, t1 in zip(ts[:-1], ts[1:]):
            h = t1 - t0
            k1 = odefunc(t0, y)
            k2 = odefunc(t0 + 0.5 * h, y + 0.5 * h * k1)
            k3 = odefunc(t0 + 0.5 * h, y + 0.5 * h * k2)
            k4 = odefunc(t1, y + h * k3)
            y = y + (h / 6.0) * (k1 + 2.0 * k2 + 2.0 * k3 + k4)
            ys.append(y)
        return jnp.stack(ys, axis=0)

    __call__ = forward


# ---------------------------------------------------------------------------
# Pure-JAX reference for validation
# ---------------------------------------------------------------------------
def reference_odefunc(encode, lo, hi, alpha, w1, w2, x, hidden_size):
    cg = (1.0 - alpha) * encode[lo] + alpha * encode[hi]
    out1 = cg @ w1.T
    out2 = cg @ w2.T
    attn = jax.nn.softmax((out1 @ out2.T) / math.sqrt(hidden_size), axis=-1)
    return attn @ x


if __name__ == "__main__":
    # small shapes: T=8 snapshots, N=16 nodes, hidden=32
    T, N, H = 8, 16, 32
    key = jax.random.PRNGKey(0)
    k_enc, k_x, k_func, k_block = jax.random.split(key, 4)

    encodings = jax.random.normal(k_enc, (T, N, H), dtype=jnp.float32)
    x = jax.random.normal(k_x, (N, H), dtype=jnp.float32)

    args = SimpleNamespace(tasktype='default', scare_snapshot='')
    func = ODEFunc(args, hidden_size=H, encodings=encodings, dropout=0.1, key=k_func)

    # tolerance accounts for the EUP approximate reciprocal in the softmax denominator
    tol = dict(atol=1e-2, rtol=1e-2)
    for t in (2.5, 3.0, 7.5):   # fractional / integer / past-the-end branches
        out = jax.block_until_ready(func(t, x))
        lo, hi, alpha = func._time_controls(float(t))
        ref = reference_odefunc(encodings, lo, hi, alpha, func.W1, func.W2, x, H)
        assert out.shape == (N, H)
        assert jnp.allclose(out, ref, **tol), f"mismatch vs reference at t={t}"

    # end-to-end ODEBlock: initial linear projection + fixed-step RK4 over the grid
    block = ODEBlock(args, encoding_size=H, time_steps=list(range(T)), key=k_block)
    traj = jax.block_until_ready(block(encodings))
    assert traj.shape == (T, N, H)
    assert bool(jnp.all(jnp.isfinite(traj)))

    print("KERNEL_OK")
</pallas_src>

<mosaic_0001>
module attributes {stable_mosaic.version = 11 : i64} {
  func.func @_odefunc_kernel(%arg0: i32, %arg1: memref<2xi32, #tpu.memory_space<smem>>, %arg2: memref<1x16x32xf32, #tpu.memory_space<vmem>>, %arg3: memref<1x16x32xf32, #tpu.memory_space<vmem>>, %arg4: memref<1xf32, #tpu.memory_space<smem>>, %arg5: memref<32x32xf32, #tpu.memory_space<vmem>>, %arg6: memref<32x32xf32, #tpu.memory_space<vmem>>, %arg7: memref<16x32xf32, #tpu.memory_space<vmem>>, %arg8: memref<16x32xf32, #tpu.memory_space<vmem>>) attributes {dimension_semantics = [#tpu.dimension_semantics<arbitrary>], iteration_bounds = array<i64: 1>, scalar_prefetch = 1 : i64, scratch_operands = 0 : i64, tpu.core_type = #tpu.core_type<tc>, window_params = [{transform_indices = @transform_0, window_bounds = array<i64: 1, 16, 32>}, {transform_indices = @transform_1, window_bounds = array<i64: 1, 16, 32>}, {transform_indices = @transform_2, window_bounds = array<i64: 1>}, {pipeline_mode = #tpu.pipeline_mode<synchronous>, transform_indices = @transform_3, window_bounds = array<i64: 32, 32>}, {pipeline_mode = #tpu.pipeline_mode<synchronous>, transform_indices = @transform_4, window_bounds = array<i64: 32, 32>}, {pipeline_mode = #tpu.pipeline_mode<synchronous>, transform_indices = @transform_5, window_bounds = array<i64: 16, 32>}, {pipeline_mode = #tpu.pipeline_mode<synchronous>, transform_indices = @transform_6, window_bounds = array<i64: 16, 32>}]} {
    %c0 = arith.constant 0 : index
    %0 = memref.load %arg4[%c0] : memref<1xf32, #tpu.memory_space<smem>>
    %c0_0 = arith.constant 0 : index
    %c0_1 = arith.constant 0 : index
    %c0_2 = arith.constant 0 : index
    %1 = vector.load %arg2[%c0_0, %c0_1, %c0_2] : memref<1x16x32xf32, #tpu.memory_space<vmem>>, vector<1x16x32xf32>
    %2 = vector.shape_cast %1 : vector<1x16x32xf32> to vector<16x32xf32>
    %c0_3 = arith.constant 0 : index
    %c0_4 = arith.constant 0 : index
    %c0_5 = arith.constant 0 : index
    %3 = vector.load %arg3[%c0_3, %c0_4, %c0_5] : memref<1x16x32xf32, #tpu.memory_space<vmem>>, vector<1x16x32xf32>
    %4 = vector.shape_cast %3 : vector<1x16x32xf32> to vector<16x32xf32>
    %cst = arith.constant 1.000000e+00 : f32
    %5 = arith.subf %cst, %0 : f32
    %6 = vector.broadcast %5 : f32 to vector<16x32xf32>
    %7 = arith.mulf %6, %2 : vector<16x32xf32>
    %8 = vector.broadcast %0 : f32 to vector<16x32xf32>
    %9 = arith.mulf %8, %4 : vector<16x32xf32>
    %10 = arith.addf %7, %9 : vector<16x32xf32>
    %c0_6 = arith.constant 0 : index
    %c0_7 = arith.constant 0 : index
    %11 = vector.load %arg5[%c0_6, %c0_7] : memref<32x32xf32, #tpu.memory_space<vmem>>, vector<32x32xf32>
    %c0_8 = arith.constant 0 : index
    %c0_9 = arith.constant 0 : index
    %12 = vector.load %arg6[%c0_8, %c0_9] : memref<32x32xf32, #tpu.memory_space<vmem>>, vector<32x32xf32>
    %c0_10 = arith.constant 0 : index
    %c0_11 = arith.constant 0 : index
    %13 = vector.load %arg7[%c0_10, %c0_11] : memref<16x32xf32, #tpu.memory_space<vmem>>, vector<16x32xf32>
    %cst_12 = arith.constant dense<0.000000e+00> : vector<16x32xf32>
    %14 = tpu.matmul %10, %11, %cst_12 {dimension_numbers = #tpu.dot_dimension_numbers<[1], [1], [0], [0], [0, 0, 1, 0], [], []>} : vector<16x32xf32>, vector<32x32xf32>, vector<16x32xf32> -> vector<16x32xf32>
    %cst_13 = arith.constant dense<0.000000e+00> : vector<16x32xf32>
    %15 = tpu.matmul %10, %12, %cst_13 {dimension_numbers = #tpu.dot_dimension_numbers<[1], [1], [0], [0], [0, 0, 1, 0], [], []>} : vector<16x32xf32>, vector<32x32xf32>, vector<16x32xf32> -> vector<16x32xf32>
    %cst_14 = arith.constant dense<0.000000e+00> : vector<16x16xf32>
    %16 = tpu.matmul %14, %15, %cst_14 {dimension_numbers = #tpu.dot_dimension_numbers<[1], [1], [0], [0], [0, 0, 1, 0], [], []>} : vector<16x32xf32>, vector<16x32xf32>, vector<16x16xf32> -> vector<16x16xf32>
    %cst_15 = arith.constant 0.176776692 : f32
    %17 = vector.broadcast %cst_15 : f32 to vector<16x16xf32>
    %18 = arith.mulf %16, %17 : vector<16x16xf32>
    %cst_16 = arith.constant dense<0xFF800000> : vector<16xf32>
    %19 = vector.multi_reduction <maximumf>, %18, %cst_16 [1] : vector<16x16xf32> to vector<16xf32>
    %20 = vector.shape_cast %19 : vector<16xf32> to vector<16x1xf32>
    %21 = vector.broadcast %20 : vector<16x1xf32> to vector<16x16xf32>
    %22 = arith.subf %18, %21 : vector<16x16xf32>
    %23 = math.exp %22 : vector<16x16xf32>
    %cst_17 = arith.constant dense<0.000000e+00> : vector<16xf32>
    %24 = vector.multi_reduction <add>, %23, %cst_17 [1] : vector<16x16xf32> to vector<16xf32>
    %25 = vector.shape_cast %24 : vector<16xf32> to vector<16x1xf32>
    %26 = tpu.reciprocal %25 {approx = true} : vector<16x1xf32> -> vector<16x1xf32>
    %27 = vector.broadcast %26 : vector<16x1xf32> to vector<16x16xf32>
    %28 = arith.mulf %23, %27 : vector<16x16xf32>
    %cst_18 = arith.constant dense<0.000000e+00> : vector<16x32xf32>
    %29 = tpu.matmul %28, %13, %cst_18 {dimension_numbers = #tpu.dot_dimension_numbers<[1], [0], [0], [1], [0, 0, 1, 1], [], []>} : vector<16x16xf32>, vector<16x32xf32>, vector<16x32xf32> -> vector<16x32xf32>
    %c0_19 = arith.constant 0 : index
    %c0_20 = arith.constant 0 : index
    %30 = vector.load %arg8[%c0_19, %c0_20] : memref<16x32xf32, #tpu.memory_space<vmem>>, vector<16x32xf32>
    tpu.vector_store %arg8[%c0_19, %c0_20], %29 {strides = array<i32>} : memref<16x32xf32, #tpu.memory_space<vmem>>, vector<16x32xf32>,
    return
  }
  func.func @transform_0(%arg0: i32, %arg1: memref<2xi32, #tpu.memory_space<smem>>) -> (i32, i32, i32) {
    %c0 = arith.constant 0 : index
    %0 = memref.load %arg1[%c0] : memref<2xi32, #tpu.memory_space<smem>>
    %c0_i32 = arith.constant 0 : i32
    %c0_i32_0 = arith.constant 0 : i32
    %c0_i32_1 = arith.constant 0 : i32
    return %0, %c0_i32, %c0_i32_0 : i32, i32, i32
  }
  func.func @transform_1(%arg0: i32, %arg1: memref<2xi32, #tpu.memory_space<smem>>) -> (i32, i32, i32) {
    %c1 = arith.constant 1 : index
    %0 = memref.load %arg1[%c1] : memref<2xi32, #tpu.memory_space<smem>>
    %c0_i32 = arith.constant 0 : i32
    %c0_i32_0 = arith.constant 0 : i32
    %c0_i32_1 = arith.constant 0 : i32
    return %0, %c0_i32, %c0_i32_0 : i32, i32, i32
  }
  func.func @transform_2(%arg0: i32, %arg1: memref<2xi32, #tpu.memory_space<smem>>) -> i32 {
    %c0_i32 = arith.constant 0 : i32
    %c0_i32_0 = arith.constant 0 : i32
    return %c0_i32 : i32
  }
  func.func @transform_3(%arg0: i32, %arg1: memref<2xi32, #tpu.memory_space<smem>>) -> (i32, i32) {
    %c0_i32 = arith.constant 0 : i32
    %c0_i32_0 = arith.constant 0 : i32
    %c0_i32_1 = arith.constant 0 : i32
    return %c0_i32, %c0_i32_0 : i32, i32
  }
  func.func @transform_4(%arg0: i32, %arg1: memref<2xi32, #tpu.memory_space<smem>>) -> (i32, i32) {
    %c0_i32 = arith.constant 0 : i32
    %c0_i32_0 = arith.constant 0 : i32
    %c0_i32_1 = arith.constant 0 : i32
    return %c0_i32, %c0_i32_0 : i32, i32
  }
  func.func @transform_5(%arg0: i32, %arg1: memref<2xi32, #tpu.memory_space<smem>>) -> (i32, i32) {
    %c0_i32 = arith.constant 0 : i32
    %c0_i32_0 = arith.constant 0 : i32
    %c0_i32_1 = arith.constant 0 : i32
    return %c0_i32, %c0_i32_0 : i32, i32
  }
  func.func @transform_6(%arg0: i32, %arg1: memref<2xi32, #tpu.memory_space<smem>>) -> (i32, i32) {
    %c0_i32 = arith.constant 0 : i32
    %c0_i32_0 = arith.constant 0 : i32
    %c0_i32_1 = arith.constant 0 : i32
    return %c0_i32, %c0_i32_0 : i32, i32
  }
}

</mosaic_0001>

<bundles_post_ra>
// kernel: _odefunc_fused.1
= control target key start
LH: loop header
LB: loop body
LE: loop exit
PB: predicated region body
PF: predicated region fallthrough
CT: control target
= control target key end

     0   :  { %s547_s27 = smov [#allocation3]   ;;  %s699_s0 = inlined_call_operand.vmem [shape: s32[2], index: 0, kind: input, shape index: {}]   ;;  %s700_s1 = inlined_call_operand.hbm [shape: f32[8,16,32], index: 1, kind: input, shape index: {}, may-alias: {1,2}]   ;;  %s701_s2 = inlined_call_operand.hbm [shape: f32[8,16,32], index: 2, kind: input, shape index: {}, may-alias: {1,2}]   ;;  %s702_s3 = inlined_call_operand.<no memory space> [shape: f32[1], index: 3, kind: input, shape index: {}]   ;;  %s703_s4 = inlined_call_operand.hbm [shape: f32[32,32], index: 4, kind: input, shape index: {}]   ;;  %s704_s5 = inlined_call_operand.hbm [shape: f32[32,32], index: 5, kind: input, shape index: {}]   ;;  %s705_s6 = inlined_call_operand.hbm [shape: f32[16,32], index: 6, kind: input, shape index: {}]   ;;  %s706_s7 = inlined_call_operand.hbm [shape: f32[16,32], index: 7, kind: output, shape index: {}]  }
   0x1   :  { %s13_s26 = sshll.u32 %s699_s0, 4  ;;  %s14_s26 = int_to_ptr.vmem [resolvable:$true] %s13_s26 }
   0x2   :  { %16 = dma.vmem_to_smem %s14_s26, 16, %s547_s27, [#allocation2] }
   0x3   :  { %537 = dma.done.wait [#allocation2], 16 }
   0x4   :  { %538 = vsyncadd [#allocation2], 4294967280 }
   0x5   :  { %20 = sfence }
   0x6   :  { %21 = vsyncpa [#allocation6], 0 }
   0x7   :  { %22 = vsyncpa [#allocation9], 0 }
   0x8   :  { %23 = vsyncpa [#allocation12], 0 }
   0x9   :  { %24 = vsyncpa [#allocation7], 0  ;;  %s341_s28 = sld [smem:[#allocation3 + $0x1]]  ;;  %s548_s29 = smov [#allocation8]  }
   0xa   :  { %s599_s30 = sshll.u32 %s548_s29, 4  ;;  %s78_s10 = sshll.u32 %s704_s5, 4  ;;  %s53_s30 = int_to_ptr.vmem [resolvable:$true] %s599_s30  ;;  %s605_s10 = int_to_ptr.hbm [resolvable:$true] %s78_s10 }
   0xb   :  { %s607_s0 = sld [smem:[#allocation3]]  ;;  %s549_s11 = smov [#allocation11]  }
   0xc   :  { %s609_s12 = sshll.u32 %s549_s11, 4  ;;  %s550_s13 = smov [#allocation5]   ;;  %s81_s12 = int_to_ptr.vmem [resolvable:$true] %s609_s12 }
   0xd   :  { %s612_s14 = sshll.u32 %s550_s13, 4  ;;  %s65_s20 = sshll.u32 %s703_s4, 4  ;;  %s36_s14 = int_to_ptr.vmem [resolvable:$true] %s612_s14  ;;  %s621_s20 = int_to_ptr.hbm [resolvable:$true] %s65_s20 }
   0xe   :  { %s397_s27 = scalar_lea.hbm %s701_s2, 128 }
   0xf   :  { %s363_s15 = sshll.u32 %s341_s28, 4 }
  0x10   :  { %s49_s5 = scalar_lea.hbm %s701_s2, %s363_s15 }
  0x11   :  { %s50_s21 = sshll.u32 %s49_s5, 4  ;;  %s362_s22 = sshll.u32 %s607_s0, 4  ;;  %s51_s21 = int_to_ptr.hbm [resolvable:$true] %s50_s21 }
  0x12   :  { %s393_s23 = sshra.s32 %s51_s21, 4  ;;  %s394_s23 = int_to_ptr.hbm [resolvable:$true] %s393_s23 }
  0x13   :  { %s395_s24 = scalar_lea.hbm %s394_s23, 16  ;;  %p398_p1 = scmp.lt.s32.totalorder %s394_s23, %s701_s2 }
  0x14   :  { %p396_p0 = scmp.ne.s32.totalorder %s394_s23, %s395_s24  ;;  %p399_p2 = scmp.lt.s32.totalorder %s397_s27, %s395_s24 }
  0x16   :  { %p400_p3 = por %p399_p2, %p398_p1 }
  0x18   :  { %p401_p4 = pnand %p400_p3, %p396_p0 }
  0x1a   :  { %404 = shalt.err (!%p401_p4)
}
  0x1b   :  { %s551_s4 = smov 128   ;;  %s552_s8 = smov 8  }
  0x1c   :  { %58 = dma.hbm_to_vmem [thread:$0]  %s51_s21, 256, %s53_s30, [#allocation9], %s551_s4, %s551_s4, %s552_s8  }
  0x1d   :  { %86 = dma.hbm_to_vmem [thread:$0]  %s605_s10, 512, %s81_s12, [#allocation12], %s551_s4, %s551_s4, %s552_s8  }
  0x1e   :  { %s32_s2 = scalar_lea.hbm %s700_s1, %s362_s22  ;;  %s553_s13 = smov [#allocation10]  }
  0x1f   :  { %s33_s11 = sshll.u32 %s32_s2, 4  ;;  %s67_s15 = sshll.u32 %s553_s13, 4  ;;  %s34_s11 = int_to_ptr.hbm [resolvable:$true] %s33_s11  ;;  %s68_s15 = int_to_ptr.vmem [resolvable:$true] %s67_s15 }
  0x20   :  { %s441_s16 = sshra.s32 %s34_s11, 4  ;;  %s445_s30 = scalar_lea.hbm %s700_s1, 128  ;;  %s442_s16 = int_to_ptr.hbm [resolvable:$true] %s441_s16 }
  0x21   :  { %s443_s17 = scalar_lea.hbm %s442_s16, 16  ;;  %p446_p6 = scmp.lt.s32.totalorder %s442_s16, %s700_s1 }
  0x22   :  { %p444_p5 = scmp.ne.s32.totalorder %s442_s16, %s443_s17  ;;  %p447_p7 = scmp.lt.s32.totalorder %s445_s30, %s443_s17 }
  0x24   :  { %p448_p8 = por %p447_p7, %p446_p6 }
  0x26   :  { %p449_p9 = pnand %p448_p8, %p444_p5 }
  0x28   :  { %452 = shalt.err (!%p449_p9)
}
  0x29   :  { %41 = dma.hbm_to_vmem [thread:$0]  %s34_s11, 256, %s36_s14, [#allocation6], %s551_s4, %s551_s4, %s552_s8  }
  0x2a   :  { %73 = dma.hbm_to_vmem [thread:$0]  %s621_s20, 512, %s68_s15, [#allocation9], %s551_s4, %s551_s4, %s552_s8  }
  0x2b   :  { %s91_s22 = sshll.u32 %s705_s6, 4  ;;  %s554_s1 = smov [#allocation13]   ;;  %s92_s22 = int_to_ptr.hbm [resolvable:$true] %s91_s22 }
  0x2c   :  { %s93_s23 = sshll.u32 %s554_s1, 4  ;;  %s94_s23 = int_to_ptr.vmem [resolvable:$true] %s93_s23 }
  0x2d   :  { %99 = dma.hbm_to_vmem [thread:$0]  %s92_s22, 256, %s94_s23, [#allocation12], %s551_s4, %s551_s4, %s552_s8  }
  0x2e   :  { %539 = dma.done.wait [#allocation6], 256  }
  0x2f   :  { %540 = vsyncadd [#allocation6], 4294967040 }
  0x30   :  { %541 = dma.done.wait [#allocation9], 768  }
  0x31   :  { %542 = vsyncadd [#allocation9], 4294966528 }
  0x32   :  { %543 = dma.done.wait [#allocation12], 768  }
  0x33   :  { %544 = vsyncadd [#allocation12], 4294966528  ;;  %vm146_vm0 = vcmask 261120   ;;  %v143_v0 = vld [vmem:[#allocation11 + $0x18] sm:$0xff]  ;;  %s127_s20 = ssub.f32 1.0, %s702_s3  ;;  %v142_v2 = vld [vmem:[#allocation11 + $0x10] sm:$0xff]  ;;  %v131_v7 = vstv %s702_s3 }
  0x34   :  { %350 = vmatpush.xpose.msk.msra.mxu1 %vm146_vm0, %v143_v0  ;;  %v139_v1 = vld [vmem:[#allocation10 + $0x18] sm:$0xff]  ;;  %v138_v3 = vld [vmem:[#allocation10 + $0x10] sm:$0xff]  ;;  %v123_v4 = vld [vmem:[#allocation5] sm:$0xff]  ;;  %vm260_vm1 = vcmask 130048   ;;  %s555_s3 = smov [#allocation14]   ;;  %s320_s29 = sshll.u32 %s706_s7, 4  ;;  %s321_s29 = int_to_ptr.hbm [resolvable:$true] %s320_s29 }
  0x35   :  { %344 = vmatpush.xpose.msk.msra.mxu0 %vm146_vm0, %v139_v1  ;;  %v125_v5 = vld [vmem:[#allocation8] sm:$0xff]  ;;  %v128_v6 = vstv %s127_s20  ;;  %v141_v8 = vld [vmem:[#allocation11 + $0x8] sm:$0xff]  ;;  %v140_v12 = vld [vmem:[#allocation11] sm:$0xff]  ;;  %s318_s26 = sshll.u32 %s555_s3, 4  ;;  %s319_s26 = int_to_ptr.vmem [resolvable:$true] %s318_s26 }
  0x36   :  { %v137_v9 = vld [vmem:[#allocation10 + $0x8] sm:$0xff]  ;;  %v129_v10 = vmul.f32 %v128_v6, %v123_v4  ;;  %v132_v11 = vmul.f32 %v131_v7, %v125_v5  ;;  %v136_v13 = vld [vmem:[#allocation10] sm:$0xff]  ;;  %v126_v16 = vld [vmem:[#allocation8 + $0x8] sm:$0xff] }
  0x37   :  { %v124_v15 = vld [vmem:[#allocation5 + $0x8] sm:$0xff]  ;;  %v133_v18 = vmul.f32 %v131_v7, %v126_v16  ;;  %v144_v41 = vld [vmem:[#allocation13] sm:$0xff] }
  0x38   :  { %351 = vmatpush.xpose.msk.msra.mxu1 %vm146_vm0, %v142_v2  ;;  %v134_v14 = vadd.f32 %v132_v11, %v129_v10  ;;  %v130_v17 = vmul.f32 %v128_v6, %v124_v15  ;;  %v145_v40 = vld [vmem:[#allocation13 + $0x8] sm:$0xff] }
  0x39   :  { %345 = vmatpush.xpose.msk.msra.mxu0 %vm146_vm0, %v138_v3  ;;  %303 = vmatpush.msra.mxu3 %v145_v40 }
  0x3a   :  { %v135_v19 = vadd.f32 %v133_v18, %v130_v17 }
  0x3b   :  { %304 = vmatpush.msra.mxu3 %v144_v41 }
  0x3c   :  { %352 = vmatpush.xpose.msk.msra.mxu1 %vm146_vm0, %v141_v8 }
  0x3d   :  { %346 = vmatpush.xpose.msk.msra.mxu0 %vm146_vm0, %v137_v9 }
  0x40   :  { %353 = vmatpush.xpose.msk.msra.mxu1 %vm146_vm0, %v140_v12 }
  0x41   :  { %347 = vmatpush.xpose.msk.msra.mxu0 %vm146_vm0, %v136_v13 }
  0x43   :  { %354 = vmatmul.msk.f32.vlgmr.msra.gmra.mxu1 %vm146_vm0, %v134_v14 }
  0x44   :  { %348 = vmatmul.msk.f32.vlgmr.msra.gmra.mxu0 %vm146_vm0, %v134_v14 }
  0x4b   :  { %355 = vmatmul.msk.f32.gmra.mxu1 %vm146_vm0, %v135_v19 }
  0x4c   :  { %349 = vmatmul.msk.f32.gmra.mxu0 %vm146_vm0, %v135_v19 }
  0xc0   :  { %v217_v20 = vpop.f32.mrf.mxu1 }
  0xc1   :  { %v182_v22 = vpop.f32.mrf.mxu0 }
  0xc8   :  { %v220_v21 = vpop.f32.mrf.mxu1 }
  0xc9   :  { %356 = vmatpush.xpose.msk.msra.mxu2 %vm146_vm0, %v220_v21  ;;  %v185_v23 = vpop.f32.mrf.mxu0 }
  0xcd   :  { %357 = vmatpush.xpose.msk.msra.mxu2 %vm146_vm0, %v217_v20 }
  0xd0   :  { %358 = vmatmul.msk.f32.vlgmr.msra.gmra.mxu2 %vm146_vm0, %v182_v22 }
  0xd8   :  { %359 = vmatmul.msk.f32.gmra.mxu2 %vm146_vm0, %v185_v23 }
 0x153   :  { %v252_v24 = vpop.f32.mrf.mxu2 }
 0x154   :  { %v258_v25 = vmul.f32 0.17677669, %v252_v24 }
 0x156   :  { %v261_v26 = vsel %vm260_vm1, %v258_v25, -inf }
 0x157   :  { %262 = vmax.xlane.f32.xlu0 %v261_v26 }
 0x15b   :  { %v255_v27 = vpop.f32.mrf.mxu2 }
 0x15c   :  { %v259_v28 = vmul.f32 0.17677669, %v255_v27 }
 0x15e   :  { %v264_v29 = vsel %vm260_vm1, %v259_v28, -inf }
 0x15f   :  { %265 = vmax.xlane.f32.xlu0 %v264_v29 }
 0x1ca   :  { %v263_v30 = vpop.xlane.xlu0 %262 }
 0x1cb   :  { %v267_v31 = vsub.f32 %v258_v25, %v263_v30 }
 0x1cd   :  { %v269_v32 = vmul.f32 1.442695, %v267_v31 }
 0x1cf   :  { %373 = vpow2.f32 %v269_v32 }
 0x1d2   :  { %v266_v33 = vpop.xlane.xlu0 %265 }
 0x1d3   :  { %v268_v34 = vsub.f32 %v259_v28, %v266_v33 }
 0x1d5   :  { %v374_v35 = vpop.eup %373  ;;  %v271_v36 = vmul.f32 1.442695, %v268_v34 }
 0x1d6   :  { %v273_v37 = vsel %vm260_vm1, %v374_v35, 0.0 }
 0x1d7   :  { %375 = vpow2.f32 %v271_v36  ;;  %274 = vadd.xlane.f32.xlu1 %v273_v37 }
 0x1dd   :  { %v376_v38 = vpop.eup %375 }
 0x1de   :  { %v276_v39 = vsel %vm260_vm1, %v376_v38, 0.0 }
 0x1df   :  { %277 = vadd.xlane.f32.xlu1 %v276_v39 }
 0x24a   :  { %v275_v42 = vpop.xlane.xlu1 %274 }
 0x24b   :  { %377 = vrcp.f32 %v275_v42 }
 0x251   :  { %v378_v43 = vpop.eup %377 }
 0x252   :  { %v278_v44 = vpop.xlane.xlu1 %277  ;;  %v281_v45 = vmul.f32 %v378_v43, %v374_v35 }
 0x253   :  { %379 = vrcp.f32 %v278_v44 }
 0x254   :  { %360 = vmatmul.msk.f32.vlgmr.msra.gmra.mxu3 %vm260_vm1, %v281_v45 }
 0x259   :  { %v380_v46 = vpop.eup %379 }
 0x25a   :  { %v282_v47 = vmul.f32 %v380_v46, %v376_v38 }
 0x25c   :  { %361 = vmatmul.msk.f32.gmra.mxu3 %vm260_vm1, %v282_v47 }
 0x2d7   :  { %v306_v48 = vpop.f32.mrf.mxu3 }
 0x2d8   :  { %312 = vst.msk [vmem:[#allocation14] sm:$0xff] %vm146_vm0, %v306_v48 }
 0x2df   :  { %v309_v49 = vpop.f32.mrf.mxu3 }
 0x2e0   :  { %313 = vst.msk [vmem:[#allocation14 + $0x8] sm:$0xff] %vm146_vm0, %v309_v49 }
 0x2e1   :  { %326 = dma.vmem_to_hbm [thread:$0]  %s319_s26, 256, %s321_s29, [#allocation7], %s551_s4, %s551_s4, %s552_s8  }
 0x2e2   :  { %545 = dma.done.wait [#allocation7], 256  }
 0x2e3   :  { %546 = vsyncadd [#allocation7], 4294967040 }
 0x2e4   :  { %331 = vsyncpa [#allocation6], 1 }
 0x2e5   :  { %332 = vsyncpa [#allocation9], 1 }
 0x2e6   :  { %333 = vsyncpa [#allocation12], 1 }
 0x2e7   :  { %334 = vsyncpa [#allocation7], 1 }

</bundles_post_ra>
